<compile_context>
chip_gen: v6e
topology: v6e:2x2x1
jax: 0.10.0
libtpu: 0.0.40
codegen_flags: <defaults>
</compile_context>

<pallas_src>
import jax
import jax.numpy as jnp
import numpy as np
from jax.experimental import pallas as pl
from jax.experimental.pallas import tpu as pltpu

LANE = 128


def _i32(v):
    """Python int (possibly a uint32 bit pattern >= 2**31) -> int32 constant."""
    v &= 0xFFFFFFFF
    if v >= 1 << 31:
        v -= 1 << 32
    return jnp.int32(v)


def _dropedge_kernel(seed_ref, params_ref, vals_ref, newvals_ref, mask_ref):
    block_rows, lanes = vals_ref.shape
    keep_rate = params_ref[0]       # f32 scalar from SMEM
    inv_keep_rate = params_ref[1]   # f32 scalar from SMEM

    # Global edge index of every slot in this tile: the PRNG counter.  A global
    # counter makes the randoms independent of the tiling and avoids the
    # correlated-adjacent-seed issue of per-tile reseeding.
    base = pl.program_id(0) * (block_rows * lanes)
    row = jax.lax.broadcasted_iota(jnp.int32, (block_rows, lanes), 0)
    col = jax.lax.broadcasted_iota(jnp.int32, (block_rows, lanes), 1)
    idx = base + row * lanes + col

    # Stateless counter hash (lowbias32) in wrapping int32 arithmetic.
    # arithmetic-shift + mask == logical shift, so this reproduces the uint32
    # hash bit-for-bit using only signed-int ops.
    x = idx ^ (seed_ref[0] * _i32(0x9E3779B9))
    x = x ^ ((x >> 16) & 0xFFFF)
    x = x * _i32(0x7FEB352D)
    x = x ^ ((x >> 15) & 0x1FFFF)
    x = x * _i32(0x846CA68B)
    x = x ^ ((x >> 16) & 0xFFFF)

    # Uniform [0, 1) from the top 24 bits (exactly representable in f32).
    u = ((x >> 8) & 0xFFFFFF).astype(jnp.float32) * jnp.float32(1.0 / (1 << 24))

    # torch: mask = floor(rand + keepRate).bool()  <=>  keep w.p. keepRate.
    keep = u < keep_rate
    newvals_ref[...] = jnp.where(keep, vals_ref[...] * inv_keep_rate,
                                 jnp.float32(0.0))
    mask_ref[...] = keep.astype(jnp.int8)


def sp_adj_drop_edge(vals, idxs, keep_rate, seed, *, block_rows=1024):
    """Fixed-shape TPU equivalent of SpAdjDropEdge.forward.

    Returns (idxs, new_vals, keep_mask):
      new_vals[e] = vals[e] / keep_rate if edge e survives, else 0.0
      keep_mask   = Bernoulli(keep_rate) keep decisions (bool, length E)
    """
    E = vals.shape[0]
    vals = vals.astype(jnp.float32)

    # Lane-dense (rows, 128) view of the edge vector.
    R = pl.cdiv(E, LANE)
    pad = R * LANE - E
    vals_p = jnp.pad(vals, (0, pad)) if pad else vals
    vals2d = vals_p.reshape(R, LANE)

    # Tile rows: big tiles amortize the ~600-cycle per-grid-step overhead.
    # Keep the row block a multiple of 32 (int8 tiling) unless a single block
    # already covers the whole array (block == array dims is always legal).
    if R <= block_rows:
        br = R
    else:
        br = max(32, (block_rows // 32) * 32)
    grid = (pl.cdiv(R, br),)

    seed_arr = jnp.asarray([seed], dtype=jnp.int32)
    params = jnp.asarray([keep_rate, 1.0 / keep_rate], dtype=jnp.float32)

    new2d, mask2d = pl.pallas_call(
        _dropedge_kernel,
        grid=grid,
        in_specs=[
            pl.BlockSpec(memory_space=pltpu.MemorySpace.SMEM),   # seed
            pl.BlockSpec(memory_space=pltpu.MemorySpace.SMEM),   # keepRate params
            pl.BlockSpec((br, LANE), lambda i: (i, 0)),          # edge values
        ],
        out_specs=(
            pl.BlockSpec((br, LANE), lambda i: (i, 0)),          # new values
            pl.BlockSpec((br, LANE), lambda i: (i, 0)),          # keep mask (i8)
        ),
        out_shape=(
            jax.ShapeDtypeStruct((R, LANE), jnp.float32),
            jax.ShapeDtypeStruct((R, LANE), jnp.int8),
        ),
        compiler_params=pltpu.CompilerParams(
            dimension_semantics=("parallel",),
        ),
    )(seed_arr, params, vals2d)

    new_vals = new2d.reshape(-1)
    keep_mask = mask2d.reshape(-1)
    if pad:
        new_vals = new_vals[:E]
        keep_mask = keep_mask[:E]
    # indices unchanged; dropped edges carry a zero value
    return idxs, new_vals, keep_mask.astype(jnp.bool_)


if __name__ == "__main__":
    key = jax.random.PRNGKey(0)
    k_row, k_col, k_val = jax.random.split(key, 3)

    # Small synthetic sparse adjacency: 32 nodes, 1000 edges.
    n_nodes = 32
    n_edges = 1000
    keep_rate = 0.7

    rows = jax.random.randint(k_row, (n_edges,), 0, n_nodes, dtype=jnp.int32)
    cols = jax.random.randint(k_col, (n_edges,), 0, n_nodes, dtype=jnp.int32)
    idxs = jnp.stack([rows, cols], axis=0)                     # (2, E)
    vals = jax.random.uniform(k_val, (n_edges,), jnp.float32)  # (E,)

    new_idxs, new_vals, keep_mask = sp_adj_drop_edge(vals, idxs, keep_rate, seed=42)
    jax.block_until_ready((new_idxs, new_vals, keep_mask))

    nv = np.asarray(jax.device_get(new_vals))
    v = np.asarray(jax.device_get(vals))
    m = np.asarray(jax.device_get(keep_mask)).astype(bool)

    assert nv.shape == (n_edges,)
    assert new_idxs.shape == (2, n_edges)
    # kept edges scaled by 1/keepRate, dropped edges zeroed
    assert np.allclose(nv[m], v[m] / np.float32(keep_rate), rtol=1e-5, atol=1e-7)
    assert np.all(nv[~m] == 0.0)
    # keep fraction roughly keepRate
    frac = float(m.mean())
    assert 0.5 < frac < 0.9, f"keep fraction {frac}"

    print("KERNEL_OK")
</pallas_src>

<mosaic_0001>
module attributes {stable_mosaic.version = 11 : i64} {
  func.func @_dropedge_kernel(%arg0: i32, %arg1: memref<1xi32, #tpu.memory_space<smem>>, %arg2: memref<2xf32, #tpu.memory_space<smem>>, %arg3: memref<8x128xf32, #tpu.memory_space<vmem>>, %arg4: memref<8x128xf32, #tpu.memory_space<vmem>>, %arg5: memref<8x128xi8, #tpu.memory_space<vmem>>) attributes {dimension_semantics = [#tpu.dimension_semantics<parallel>], iteration_bounds = array<i64: 1>, scalar_prefetch = 0 : i64, scratch_operands = 0 : i64, tpu.core_type = #tpu.core_type<tc>, window_params = [{transform_indices = @transform_0, window_bounds = array<i64: 1>}, {transform_indices = @transform_1, window_bounds = array<i64: 2>}, {transform_indices = @transform_2, window_bounds = array<i64: 8, 128>}, {transform_indices = @transform_3, window_bounds = array<i64: 8, 128>}, {transform_indices = @transform_4, window_bounds = array<i64: 8, 128>}]} {
    %c0 = arith.constant 0 : index
    %0 = memref.load %arg2[%c0] : memref<2xf32, #tpu.memory_space<smem>>
    %c1 = arith.constant 1 : index
    %1 = memref.load %arg2[%c1] : memref<2xf32, #tpu.memory_space<smem>>
    %c1024_i32 = arith.constant 1024 : i32
    %2 = arith.muli %arg0, %c1024_i32 : i32
    %3 = tpu.iota {dimensions = array<i32: 0>} : vector<8x128xi32>
    %4 = tpu.iota {dimensions = array<i32: 1>} : vector<8x128xi32>
    %c128_i32 = arith.constant 128 : i32
    %5 = vector.broadcast %c128_i32 : i32 to vector<8x128xi32>
    %6 = arith.muli %3, %5 : vector<8x128xi32>
    %7 = vector.broadcast %2 : i32 to vector<8x128xi32>
    %8 = arith.addi %7, %6 : vector<8x128xi32>
    %9 = arith.addi %8, %4 : vector<8x128xi32>
    %c0_0 = arith.constant 0 : index
    %10 = memref.load %arg1[%c0_0] : memref<1xi32, #tpu.memory_space<smem>>
    %c-1640531527_i32 = arith.constant -1640531527 : i32
    %11 = arith.muli %10, %c-1640531527_i32 : i32
    %12 = vector.broadcast %11 : i32 to vector<8x128xi32>
    %13 = arith.xori %9, %12 : vector<8x128xi32>
    %c16_i32 = arith.constant 16 : i32
    %14 = vector.broadcast %c16_i32 : i32 to vector<8x128xi32>
    %15 = arith.shrsi %13, %14 : vector<8x128xi32>
    %c65535_i32 = arith.constant 65535 : i32
    %16 = vector.broadcast %c65535_i32 : i32 to vector<8x128xi32>
    %17 = arith.andi %15, %16 : vector<8x128xi32>
    %18 = arith.xori %13, %17 : vector<8x128xi32>
    %c2146121005_i32 = arith.constant 2146121005 : i32
    %19 = vector.broadcast %c2146121005_i32 : i32 to vector<8x128xi32>
    %20 = arith.muli %18, %19 : vector<8x128xi32>
    %c15_i32 = arith.constant 15 : i32
    %21 = vector.broadcast %c15_i32 : i32 to vector<8x128xi32>
    %22 = arith.shrsi %20, %21 : vector<8x128xi32>
    %c131071_i32 = arith.constant 131071 : i32
    %23 = vector.broadcast %c131071_i32 : i32 to vector<8x128xi32>
    %24 = arith.andi %22, %23 : vector<8x128xi32>
    %25 = arith.xori %20, %24 : vector<8x128xi32>
    %c-2073254261_i32 = arith.constant -2073254261 : i32
    %26 = vector.broadcast %c-2073254261_i32 : i32 to vector<8x128xi32>
    %27 = arith.muli %25, %26 : vector<8x128xi32>
    %c16_i32_1 = arith.constant 16 : i32
    %28 = vector.broadcast %c16_i32_1 : i32 to vector<8x128xi32>
    %29 = arith.shrsi %27, %28 : vector<8x128xi32>
    %c65535_i32_2 = arith.constant 65535 : i32
    %30 = vector.broadcast %c65535_i32_2 : i32 to vector<8x128xi32>
    %31 = arith.andi %29, %30 : vector<8x128xi32>
    %32 = arith.xori %27, %31 : vector<8x128xi32>
    %c8_i32 = arith.constant 8 : i32
    %33 = vector.broadcast %c8_i32 : i32 to vector<8x128xi32>
    %34 = arith.shrsi %32, %33 : vector<8x128xi32>
    %c16777215_i32 = arith.constant 16777215 : i32
    %35 = vector.broadcast %c16777215_i32 : i32 to vector<8x128xi32>
    %36 = arith.andi %34, %35 : vector<8x128xi32>
    %37 = arith.sitofp %36 : vector<8x128xi32> to vector<8x128xf32>
    %cst = arith.constant 5.96046448E-8 : f32
    %38 = vector.broadcast %cst : f32 to vector<8x128xf32>
    %39 = arith.mulf %37, %38 : vector<8x128xf32>
    %40 = vector.broadcast %0 : f32 to vector<8x128xf32>
    %41 = arith.cmpf olt, %39, %40 : vector<8x128xf32>
    %c0_3 = arith.constant 0 : index
    %c0_4 = arith.constant 0 : index
    %42 = vector.load %arg3[%c0_3, %c0_4] : memref<8x128xf32, #tpu.memory_space<vmem>>, vector<8x128xf32>
    %43 = vector.broadcast %1 : f32 to vector<8x128xf32>
    %44 = arith.mulf %42, %43 : vector<8x128xf32>
    %cst_5 = arith.constant 0.000000e+00 : f32
    %45 = vector.broadcast %cst_5 : f32 to vector<8x128xf32>
    %46 = arith.select %41, %44, %45 : vector<8x128xi1>, vector<8x128xf32>
    %c0_6 = arith.constant 0 : index
    %c0_7 = arith.constant 0 : index
    %47 = vector.load %arg4[%c0_6, %c0_7] : memref<8x128xf32, #tpu.memory_space<vmem>>, vector<8x128xf32>
    tpu.vector_store %arg4[%c0_6, %c0_7], %46 {strides = array<i32>} : memref<8x128xf32, #tpu.memory_space<vmem>>, vector<8x128xf32>,
    %48 = arith.extui %41 : vector<8x128xi1> to vector<8x128xi8>
    %c0_8 = arith.constant 0 : index
    %c0_9 = arith.constant 0 : index
    %49 = vector.load %arg5[%c0_8, %c0_9] : memref<8x128xi8, #tpu.memory_space<vmem>>, vector<8x128xi8>
    tpu.vector_store %arg5[%c0_8, %c0_9], %48 {strides = array<i32>} : memref<8x128xi8, #tpu.memory_space<vmem>>, vector<8x128xi8>,
    return
  }
  func.func @transform_0(%arg0: i32) -> i32 {
    %c0_i32 = arith.constant 0 : i32
    %c0_i32_0 = arith.constant 0 : i32
    return %c0_i32 : i32
  }
  func.func @transform_1(%arg0: i32) -> i32 {
    %c0_i32 = arith.constant 0 : i32
    %c0_i32_0 = arith.constant 0 : i32
    return %c0_i32 : i32
  }
  func.func @transform_2(%arg0: i32) -> (i32, i32) {
    %c0_i32 = arith.constant 0 : i32
    %c0_i32_0 = arith.constant 0 : i32
    return %arg0, %c0_i32 : i32, i32
  }
  func.func @transform_3(%arg0: i32) -> (i32, i32) {
    %c0_i32 = arith.constant 0 : i32
    %c0_i32_0 = arith.constant 0 : i32
    return %arg0, %c0_i32 : i32, i32
  }
  func.func @transform_4(%arg0: i32) -> (i32, i32) {
    %c0_i32 = arith.constant 0 : i32
    %c0_i32_0 = arith.constant 0 : i32
    return %arg0, %c0_i32 : i32, i32
  }
}

</mosaic_0001>

<bundles_post_ra>
// kernel: tpu_custom_call.1
= control target key start
LH: loop header
LB: loop body
LE: loop exit
PB: predicated region body
PF: predicated region fallthrough
CT: control target
= control target key end

     0   :  { %11 = vsyncpa [#allocation6], 0  ;;  %s252_s0 = inlined_call_operand.<no memory space> [shape: s32[1], index: 0, kind: input, shape index: {}]   ;;  %s253_s1 = inlined_call_operand.vmem [shape: f32[2], index: 1, kind: input, shape index: {}]   ;;  %s254_s2 = inlined_call_operand.hbm [shape: f32[8,128], index: 2, kind: input, shape index: {}]   ;;  %s255_s3 = inlined_call_operand.hbm [shape: f32[8,128], index: 3, kind: output, shape index: {0}]   ;;  %s256_s4 = inlined_call_operand.hbm [shape: s8[8,128], index: 4, kind: output, shape index: {1}]  }
   0x1   :  { %12 = vsyncpa [#allocation4], 0 }
   0x2   :  { %13 = vsyncpa [#allocation5], 0 }
   0x3   :  { %14 = vsyncpa [#allocation10], 0  ;;  %s23_s17 = sshll.u32 %s253_s1, 4  ;;  %s24_s17 = int_to_ptr.vmem [resolvable:$true] %s23_s17 }
   0x4   :  { %s127_s18 = scalar_lea.vmem %s24_s17, 16  ;;  %p132_p1 = scmp.lt.s32.totalorder %s24_s17, %s24_s17 }
   0x5   :  { %p128_p0 = scmp.ne.s32.totalorder %s24_s17, %s127_s18  ;;  %p133_p2 = scmp.lt.s32.totalorder %s127_s18, %s127_s18 }
   0x7   :  { %p134_p3 = por %p133_p2, %p132_p1 }
   0x9   :  { %p135_p4 = pnand %p134_p3, %p128_p0 }
   0xb   :  { %138 = shalt.err (!%p135_p4)
}
   0xc   :  { %s207_s19 = smov [#allocation3]   ;;  %s208_s20 = smov [#allocation7]  }
   0xd   :  { %26 = dma.vmem_to_smem %s24_s17, 16, %s207_s19, [#allocation6]  }
   0xe   :  { %s33_s21 = sshll.u32 %s208_s20, 4  ;;  %s34_s21 = int_to_ptr.vmem [resolvable:$true] %s33_s21 }
   0xf   :  { %s147_s22 = scalar_lea.vmem %s34_s21, 128  ;;  %p152_p6 = scmp.lt.s32.totalorder %s34_s21, %s34_s21 }
  0x10   :  { %p148_p5 = scmp.ne.s32.totalorder %s34_s21, %s147_s22  ;;  %p153_p7 = scmp.lt.s32.totalorder %s147_s22, %s147_s22 }
  0x12   :  { %p154_p8 = por %p153_p7, %p152_p6 }
  0x14   :  { %p155_p9 = pnand %p154_p8, %p148_p5 }
  0x16   :  { %158 = shalt.err (!%p155_p9)
}
  0x17   :  { %36 = dma.hbm_to_vmem [thread:$0]  %s254_s2, 128, %s34_s21, [#allocation4]  }
  0x18   :  { %199 = dma.done.wait [#allocation6], 16  }
  0x19   :  { %200 = vsyncadd [#allocation6], 4294967280 }
  0x1a   :  { %201 = dma.done.wait [#allocation4], 128  }
  0x1b   :  { %202 = vsyncadd [#allocation4], 4294967168 }
  0x1c   :  { %43 = sfence }
  0x1d   :  { %v49_v0 = vlaneseq  ;;  %s58_s26 = smul.u32 2654435769, %s252_s0  ;;  %s117_s2 = sld [smem:[#allocation3 + $0x1]]  ;;  %v78_v16 = vld [vmem:[#allocation7] sm:$0xff]  ;;  %v211_v23 = vmov 0  }
  0x1e   :  { %s46_s27 = sld [smem:[#allocation3]]  ;;  %s209_s0 = smov [#allocation8]  }
  0x1f   :  { %v50_v1 = vshrl.u32 %v49_v0, 7  ;;  %v52_v2 = vand.u32 127, %v49_v0  ;;  %v59_v4 = vstv %s58_s26  ;;  %s93_s28 = sshll.u32 %s209_s0, 4  ;;  %s210_s29 = smov [#allocation9]   ;;  %s94_s28 = int_to_ptr.vmem [resolvable:$true] %s93_s28 }
  0x20   :  { %s103_s30 = sshll.u32 %s210_s29, 4  ;;  %s159_s5 = scalar_lea.vmem %s94_s28, 128  ;;  %s104_s30 = int_to_ptr.vmem [resolvable:$true] %s103_s30 }
  0x21   :  { %v53_v3 = vmul.u32 128, %v50_v1  ;;  %p160_p10 = scmp.ne.s32.totalorder %s94_s28, %s159_s5  ;;  %p164_p11 = scmp.lt.s32.totalorder %s94_s28, %s94_s28 }
  0x22   :  { %p165_p12 = scmp.lt.s32.totalorder %s159_s5, %s159_s5 }
  0x23   :  { %v56_v5 = vadd.s32 %v53_v3, %v52_v2  ;;  %v79_v17 = vstv %s117_s2 }
  0x24   :  { %v76_v19 = vstv %s46_s27  ;;  %v80_v20 = vmul.f32 %v79_v17, %v78_v16  ;;  %p166_p13 = por %p165_p12, %p164_p11 }
  0x25   :  { %v60_v6 = vxor.u32 %v59_v4, %v56_v5 }
  0x26   :  { %p167_p0 = pnand %p166_p13, %p160_p10 }
  0x27   :  { %v118_v7 = vshrl.u32 %v60_v6, 16 }
  0x29   :  { %v63_v8 = vxor.u32 %v118_v7, %v60_v6 }
  0x2b   :  { %v64_v9 = vmul.u32 2146121005, %v63_v8 }
  0x2d   :  { %v119_v10 = vshrl.u32 %v64_v9, 15 }
  0x2f   :  { %v67_v11 = vxor.u32 %v119_v10, %v64_v9 }
  0x31   :  { %v68_v12 = vmul.u32 2221713035, %v67_v11 }
  0x33   :  { %v120_v13 = vshrl.u32 %v68_v12, 16 }
  0x35   :  { %v71_v14 = vxor.u32 %v120_v13, %v68_v12 }
  0x37   :  { %v121_v15 = vshrl.u32 %v71_v14, 8 }
  0x39   :  { %v74_v18 = vcvt.s32.f32 %v121_v15 }
  0x3b   :  { %v75_v21 = vmul.f32 5.9604645e-08, %v74_v18 }
  0x3d   :  { %vm77_vm0 = vcmp.lt.f32.partialorder %v75_v21, %v76_v19 }
  0x3e   :  { %v81_v22 = vsel %vm77_vm0, %v80_v20, 0.0  ;;  %vm83_vm1 = vmpackc.low %vm77_vm0, %vm77_vm0 }
  0x3f   :  { %82 = vst [vmem:[#allocation8] sm:$0xff] %v81_v22  ;;  %vm84_vm2 = vmpackc.even %vm83_vm1, %vm83_vm1 }
  0x40   :  { %v85_v24 = vsel %vm84_vm2, 16843009, %v211_v23 }
  0x41   :  { %170 = shalt.err (!%p167_p0)
}
  0x42   :  { %96 = dma.vmem_to_hbm [thread:$0]  %s94_s28, 128, %s255_s3, [#allocation5]   ;;  %86 = vst [vmem:[#allocation9] sm:$0x3] %v85_v24 }
  0x43   :  { %s179_s8 = scalar_lea.vmem %s104_s30, 32  ;;  %p184_p2 = scmp.lt.s32.totalorder %s104_s30, %s104_s30 }
  0x44   :  { %p180_p1 = scmp.ne.s32.totalorder %s104_s30, %s179_s8  ;;  %p185_p3 = scmp.lt.s32.totalorder %s179_s8, %s179_s8 }
  0x46   :  { %p186_p4 = por %p185_p3, %p184_p2 }
  0x48   :  { %p187_p5 = pnand %p186_p4, %p180_p1 }
  0x4a   :  { %190 = shalt.err (!%p187_p5)
}
  0x4b   :  { %106 = dma.vmem_to_hbm [thread:$0]  %s104_s30, 32, %s256_s4, [#allocation10]  }
  0x4c   :  { %203 = dma.done.wait [#allocation5], 128  }
  0x4d   :  { %204 = vsyncadd [#allocation5], 4294967168 }
  0x4e   :  { %205 = dma.done.wait [#allocation10], 32  }
  0x4f   :  { %206 = vsyncadd [#allocation10], 4294967264 }
  0x50   :  { %113 = vsyncpa [#allocation4], 1 }
  0x51   :  { %114 = vsyncpa [#allocation5], 1 }
  0x52   :  { %115 = vsyncpa [#allocation10], 1 }
  0x53   :  { %116 = vsyncpa [#allocation6], 1 }

</bundles_post_ra>
